<compile_context>
chip_gen: v7x
topology: tpu7x:2x2x1
jax: 0.10.0
libtpu: 0.0.40
codegen_flags: <defaults>
</compile_context>

<pallas_src>
import functools

import jax
import jax.numpy as jnp
from jax.experimental import pallas as pl
from jax.experimental.pallas import tpu as pltpu


def _fused_head_kernel(layers_ref, w_ref, b_ref, fcw_ref, fcb_ref, out_ref):
    """Dynamic layer fusion at CLS + (pool-folded) fc + sigmoid.

    layers_ref : (L, Bt, H)   f32  CLS hidden state of each encoder layer
    w_ref      : (1, H)       f32  dynamic-fusion classifier weight, Linear(H, 1)
    b_ref      : (1,)         f32  classifier bias (SMEM scalar)
    fcw_ref    : (H, Cpad)    f32  fc weight with avg_pool folded in, lane-padded
    fcb_ref    : (1, Cpad)    f32  fc bias, lane-padded
    out_ref    : (Bt, Cpad)   f32  sigmoid(fc(...)), padded columns are junk
    """
    x = layers_ref[...].astype(jnp.float32)            # (L, Bt, H)
    w = w_ref[...].astype(jnp.float32)                 # (1, H)
    bias = b_ref[0]

    # layer_logits[l, b] = layers[l, b, :] @ w + bias   -> keep L on leading axis
    logits = jnp.sum(x * w[None, :, :], axis=-1, keepdims=True) + bias   # (L, Bt, 1)

    # softmax over the layer axis (leading, non-lane axis -> plain VPU ops)
    m = jnp.max(logits, axis=0, keepdims=True)
    e = jnp.exp(logits - m)
    dist = e / jnp.sum(e, axis=0, keepdims=True)                          # (L, Bt, 1)

    # weighted sum of layers == torch.matmul(dist.unsqueeze(2), seq_out).squeeze(2)
    fused = jnp.sum(dist * x, axis=0)                                     # (Bt, H)

    # dropout (p=0.2) is identity at inference; avg_pool1d folded into fcw.
    logit = jnp.dot(fused, fcw_ref[...], preferred_element_type=jnp.float32)
    logit = logit + fcb_ref[...]

    # numerically-stable sigmoid (torch.sigmoid)
    en = jnp.exp(-jnp.abs(logit))
    out_ref[...] = jnp.where(logit >= 0, 1.0 / (1.0 + en), en / (1.0 + en))


def finetune_head(hidden_states, cls_w, cls_b, fc_w, fc_b, *, avg_size, block_b=None):
    """hidden_states: (L+1, B, S, H). Index 0 (embedding output) is dropped,
    matching `all_encoder_layers[1:]`; only the CLS column feeds the kernel."""
    # struc == 'cls': per-position fusion results at s>0 are discarded anyway,
    # so slice CLS up front -> DMA/compute shrink by a factor of S.
    layers_cls = hidden_states[1:, :, 0, :]             # (L, B, H)
    L, B, H = layers_cls.shape
    D, C = fc_w.shape                                    # D == H + 1 - avg_size

    # Fold avg_pool1d(kernel=avg_size, stride=1) into the fc weight:
    #   W'[h, c] = (1/avg_size) * sum_{d : d <= h < d+avg_size, 0 <= d < D} fc_w[d, c]
    fcw_fold = jnp.zeros((H, C), jnp.float32)
    for k in range(avg_size):
        fcw_fold = fcw_fold.at[k:k + D, :].add(fc_w.astype(jnp.float32))
    fcw_fold = fcw_fold * (1.0 / avg_size)

    # Lane-dense output: pad class dim to a multiple of 128.
    C_pad = ((C + 127) // 128) * 128
    fcw_pad = jnp.zeros((H, C_pad), jnp.float32).at[:, :C].set(fcw_fold)
    fcb_pad = jnp.zeros((1, C_pad), jnp.float32).at[:, :C].set(fc_b.astype(jnp.float32))

    # Batch tiling (single full-B block for small demo shapes; multiple-of-8
    # tiles at production B so both v7x TensorCores get work).
    if block_b is None:
        block_b = B if (B <= 128 or B % 8 != 0) else 128
    grid = (pl.cdiv(B, block_b),)

    out = pl.pallas_call(
        _fused_head_kernel,
        out_shape=jax.ShapeDtypeStruct((B, C_pad), jnp.float32),
        grid=grid,
        in_specs=[
            pl.BlockSpec((L, block_b, H), lambda i: (0, i, 0)),
            pl.BlockSpec((1, H), lambda i: (0, 0)),
            pl.BlockSpec(memory_space=pltpu.MemorySpace.SMEM),
            pl.BlockSpec((H, C_pad), lambda i: (0, 0)),
            pl.BlockSpec((1, C_pad), lambda i: (0, 0)),
        ],
        out_specs=pl.BlockSpec((block_b, C_pad), lambda i: (i, 0)),
        compiler_params=pltpu.CompilerParams(
            dimension_semantics=("parallel",)),
    )(layers_cls, cls_w, cls_b, fcw_pad, fcb_pad)

    return out[:, :C]


def _reference(hidden_states, cls_w, cls_b, fc_w, fc_b, avg_size):
    """Pure-JAX reference of the same forward pass (mirrors the torch module)."""
    layers = hidden_states[1:]
    logits = jnp.einsum('lbsh,h->bsl', layers, cls_w[0]) + cls_b[0]
    dist = jax.nn.softmax(logits, axis=-1)
    fused = jnp.einsum('bsl,lbsh->bsh', dist, layers)
    x = fused[:, 0, :]
    D = x.shape[1] - avg_size + 1
    pooled = jnp.mean(jnp.stack([x[:, k:k + D] for k in range(avg_size)], 0), 0)
    return jax.nn.sigmoid(pooled @ fc_w + fc_b)


if __name__ == "__main__":
    # Small shapes consistent with the module (H stands in for 768).
    L_layers, B, S, H = 4, 2, 8, 32
    avg_size = 4
    num_classes = 5
    D_in = H + 1 - avg_size                      # fc input dim: 768 + 1 - avg_size

    key = jax.random.PRNGKey(0)
    k1, k2, k3, k4 = jax.random.split(key, 4)

    # Synthetic stand-in for bert_output.hidden_states (L+1 layers incl. embeddings).
    hidden_states = jax.random.normal(k1, (L_layers + 1, B, S, H), jnp.float32)

    # Dynamic-fusion classifier: nn.Linear(bert_hidden_size, 1)
    cls_w = 0.05 * jax.random.normal(k2, (1, H), jnp.float32)
    cls_b = jnp.array([0.01], jnp.float32)

    # Final fc: nn.Linear(H + 1 - avg_size, num_classes), weight stored transposed.
    fc_w = 0.05 * jax.random.normal(k3, (D_in, num_classes), jnp.float32)
    fc_b = 0.05 * jax.random.normal(k4, (1, num_classes), jnp.float32)

    run = jax.jit(functools.partial(finetune_head, avg_size=avg_size))
    out = run(hidden_states, cls_w, cls_b, fc_w, fc_b)
    jax.block_until_ready(out)

    ref = _reference(hidden_states, cls_w, cls_b, fc_w, fc_b, avg_size)
    assert out.shape == (B, num_classes), out.shape
    assert jnp.allclose(out, ref, atol=1e-5, rtol=1e-5), (out, ref)
    print("KERNEL_OK")
</pallas_src>

<mosaic_0001>
module attributes {stable_mosaic.version = 11 : i64} {
  func.func @_fused_head_kernel(%arg0: i32, %arg1: memref<4x2x32xf32, #tpu.memory_space<vmem>>, %arg2: memref<1x32xf32, #tpu.memory_space<vmem>>, %arg3: memref<1xf32, #tpu.memory_space<smem>>, %arg4: memref<32x128xf32, #tpu.memory_space<vmem>>, %arg5: memref<1x128xf32, #tpu.memory_space<vmem>>, %arg6: memref<2x128xf32, #tpu.memory_space<vmem>>) attributes {dimension_semantics = [#tpu.dimension_semantics<parallel>], iteration_bounds = array<i64: 1>, scalar_prefetch = 0 : i64, scratch_operands = 0 : i64, tpu.core_type = #tpu.core_type<tc>, window_params = [{transform_indices = @transform_0, window_bounds = array<i64: 4, 2, 32>}, {pipeline_mode = #tpu.pipeline_mode<synchronous>, transform_indices = @transform_1, window_bounds = array<i64: 1, 32>}, {transform_indices = @transform_2, window_bounds = array<i64: 1>}, {pipeline_mode = #tpu.pipeline_mode<synchronous>, transform_indices = @transform_3, window_bounds = array<i64: 32, 128>}, {pipeline_mode = #tpu.pipeline_mode<synchronous>, transform_indices = @transform_4, window_bounds = array<i64: 1, 128>}, {transform_indices = @transform_5, window_bounds = array<i64: 2, 128>}]} {
    %c0 = arith.constant 0 : index
    %c0_0 = arith.constant 0 : index
    %c0_1 = arith.constant 0 : index
    %0 = vector.load %arg1[%c0, %c0_0, %c0_1] : memref<4x2x32xf32, #tpu.memory_space<vmem>>, vector<4x2x32xf32>
    %c0_2 = arith.constant 0 : index
    %c0_3 = arith.constant 0 : index
    %1 = vector.load %arg2[%c0_2, %c0_3] : memref<1x32xf32, #tpu.memory_space<vmem>>, vector<1x32xf32>
    %c0_4 = arith.constant 0 : index
    %2 = memref.load %arg3[%c0_4] : memref<1xf32, #tpu.memory_space<smem>>
    %3 = vector.shape_cast %1 : vector<1x32xf32> to vector<1x1x32xf32>
    %4 = vector.broadcast %3 : vector<1x1x32xf32> to vector<4x2x32xf32>
    %5 = arith.mulf %0, %4 : vector<4x2x32xf32>
    %cst = arith.constant dense<0.000000e+00> : vector<4x2xf32>
    %6 = vector.multi_reduction <add>, %5, %cst [2] : vector<4x2x32xf32> to vector<4x2xf32>
    %7 = vector.shape_cast %6 : vector<4x2xf32> to vector<4x2x1xf32>
    %8 = vector.broadcast %2 : f32 to vector<4x2x1xf32>
    %9 = arith.addf %7, %8 : vector<4x2x1xf32>
    %cst_5 = arith.constant dense<0xFF800000> : vector<2x1xf32>
    %10 = vector.multi_reduction <maximumf>, %9, %cst_5 [0] : vector<4x2x1xf32> to vector<2x1xf32>
    %11 = vector.shape_cast %10 : vector<2x1xf32> to vector<1x2x1xf32>
    %12 = vector.broadcast %11 : vector<1x2x1xf32> to vector<4x2x1xf32>
    %13 = arith.subf %9, %12 : vector<4x2x1xf32>
    %14 = math.exp %13 : vector<4x2x1xf32>
    %cst_6 = arith.constant dense<0.000000e+00> : vector<2x1xf32>
    %15 = vector.multi_reduction <add>, %14, %cst_6 [0] : vector<4x2x1xf32> to vector<2x1xf32>
    %16 = vector.shape_cast %15 : vector<2x1xf32> to vector<1x2x1xf32>
    %17 = vector.broadcast %16 : vector<1x2x1xf32> to vector<4x2x1xf32>
    %18 = arith.divf %14, %17 : vector<4x2x1xf32>
    %19 = vector.broadcast %18 : vector<4x2x1xf32> to vector<4x2x32xf32>
    %20 = arith.mulf %19, %0 : vector<4x2x32xf32>
    %cst_7 = arith.constant dense<0.000000e+00> : vector<2x32xf32>
    %21 = vector.multi_reduction <add>, %20, %cst_7 [0] : vector<4x2x32xf32> to vector<2x32xf32>
    %c0_8 = arith.constant 0 : index
    %c0_9 = arith.constant 0 : index
    %22 = vector.load %arg4[%c0_8, %c0_9] : memref<32x128xf32, #tpu.memory_space<vmem>>, vector<32x128xf32>
    %cst_10 = arith.constant dense<0.000000e+00> : vector<2x128xf32>
    %23 = tpu.matmul %21, %22, %cst_10 {dimension_numbers = #tpu.dot_dimension_numbers<[1], [0], [0], [1], [0, 0, 1, 1], [], []>} : vector<2x32xf32>, vector<32x128xf32>, vector<2x128xf32> -> vector<2x128xf32>
    %c0_11 = arith.constant 0 : index
    %c0_12 = arith.constant 0 : index
    %24 = vector.load %arg5[%c0_11, %c0_12] : memref<1x128xf32, #tpu.memory_space<vmem>>, vector<1x128xf32>
    %25 = vector.broadcast %24 : vector<1x128xf32> to vector<2x128xf32>
    %26 = arith.addf %23, %25 : vector<2x128xf32>
    %27 = math.absf %26 : vector<2x128xf32>
    %cst_13 = arith.constant 0.000000e+00 : f32
    %28 = vector.broadcast %cst_13 : f32 to vector<2x128xf32>
    %29 = arith.subf %28, %27 : vector<2x128xf32>
    %30 = math.exp %29 : vector<2x128xf32>
    %cst_14 = arith.constant 0.000000e+00 : f32
    %31 = vector.broadcast %cst_14 : f32 to vector<2x128xf32>
    %32 = arith.cmpf oge, %26, %31 : vector<2x128xf32>
    %cst_15 = arith.constant 1.000000e+00 : f32
    %33 = vector.broadcast %cst_15 : f32 to vector<2x128xf32>
    %34 = arith.addf %33, %30 : vector<2x128xf32>
    %cst_16 = arith.constant 1.000000e+00 : f32
    %35 = vector.broadcast %cst_16 : f32 to vector<2x128xf32>
    %36 = arith.divf %35, %34 : vector<2x128xf32>
    %cst_17 = arith.constant 1.000000e+00 : f32
    %37 = vector.broadcast %cst_17 : f32 to vector<2x128xf32>
    %38 = arith.addf %37, %30 : vector<2x128xf32>
    %39 = arith.divf %30, %38 : vector<2x128xf32>
    %40 = arith.select %32, %36, %39 : vector<2x128xi1>, vector<2x128xf32>
    %c0_18 = arith.constant 0 : index
    %c0_19 = arith.constant 0 : index
    %41 = vector.load %arg6[%c0_18, %c0_19] : memref<2x128xf32, #tpu.memory_space<vmem>>, vector<2x128xf32>
    tpu.vector_store %arg6[%c0_18, %c0_19], %40 {strides = array<i32>} : memref<2x128xf32, #tpu.memory_space<vmem>>, vector<2x128xf32>,
    return
  }
  func.func @transform_0(%arg0: i32) -> (i32, i32, i32) {
    %c0_i32 = arith.constant 0 : i32
    %c0_i32_0 = arith.constant 0 : i32
    %c0_i32_1 = arith.constant 0 : i32
    return %c0_i32, %arg0, %c0_i32_0 : i32, i32, i32
  }
  func.func @transform_1(%arg0: i32) -> (i32, i32) {
    %c0_i32 = arith.constant 0 : i32
    %c0_i32_0 = arith.constant 0 : i32
    %c0_i32_1 = arith.constant 0 : i32
    return %c0_i32, %c0_i32_0 : i32, i32
  }
  func.func @transform_2(%arg0: i32) -> i32 {
    %c0_i32 = arith.constant 0 : i32
    %c0_i32_0 = arith.constant 0 : i32
    return %c0_i32 : i32
  }
  func.func @transform_3(%arg0: i32) -> (i32, i32) {
    %c0_i32 = arith.constant 0 : i32
    %c0_i32_0 = arith.constant 0 : i32
    %c0_i32_1 = arith.constant 0 : i32
    return %c0_i32, %c0_i32_0 : i32, i32
  }
  func.func @transform_4(%arg0: i32) -> (i32, i32) {
    %c0_i32 = arith.constant 0 : i32
    %c0_i32_0 = arith.constant 0 : i32
    %c0_i32_1 = arith.constant 0 : i32
    return %c0_i32, %c0_i32_0 : i32, i32
  }
  func.func @transform_5(%arg0: i32) -> (i32, i32) {
    %c0_i32 = arith.constant 0 : i32
    %c0_i32_0 = arith.constant 0 : i32
    return %arg0, %c0_i32 : i32, i32
  }
}

</mosaic_0001>

<bundles_post_ra>
// kernel: finetune_head.1
= control target key start
LH: loop header
LB: loop body
LE: loop exit
PB: predicated region body
PF: predicated region fallthrough
CT: control target
= control target key end

     0   :  { %vm38_vm0 = vcmask 254976   ;;  %s387_s0 = inlined_call_operand.vmem [shape: f32[4,2,32], index: 0, kind: input, shape index: {}]   ;;  %s388_s1 = inlined_call_operand.vmem [shape: f32[1,32], index: 1, kind: input, shape index: {}]   ;;  %s389_s2 = inlined_call_operand.<no memory space> [shape: f32[1], index: 2, kind: input, shape index: {}]   ;;  %s390_s3 = inlined_call_operand.vmem [shape: f32[32,128], index: 3, kind: input, shape index: {}]   ;;  %s391_s4 = inlined_call_operand.vmem [shape: f32[1,128], index: 4, kind: input, shape index: {}]   ;;  %s392_s5 = inlined_call_operand.hbm [shape: f32[2,128], index: 5, kind: output, shape index: {}]  }
   0x1   :  { %v313_v0 = vld [vmem:[%s387_s0 + $0x4] sm:$0x3]  ;;  %v209_v1 = vld [vmem:[%s388_s1] ss:$0 sm:$0xff]  ;;  %v327_v4 = vld [vmem:[%s387_s0 + $0x6] sm:$0x3] }
   0x2   :  { %v36_v2 = vmul.f32 %v209_v1, %v313_v0  ;;  %v322_v3 = vld [vmem:[%s387_s0] sm:$0x3]  ;;  %v332_v5 = vld [vmem:[%s387_s0 + $0x2] sm:$0x3]  ;;  %v37_v7 = vmul.f32 %v209_v1, %v327_v4 }
   0x3   :  { %v34_v6 = vmul.f32 %v209_v1, %v322_v3  ;;  %v35_v8 = vmul.f32 %v209_v1, %v332_v5 }
   0x4   :  { %11 = vsyncpa [#allocation4], 0  ;;  %v45_v9 = vsel %vm38_vm0, %v36_v2, 0.0  ;;  %v48_v11 = vsel %vm38_vm0, %v37_v7, 0.0  ;;  %v99_v13 = vld [vmem:[%s390_s3] sm:$0xff]  ;;  %v100_v14 = vld [vmem:[%s390_s3 + $0x8] sm:$0xff]  ;;  %v51_v21 = vstv %s389_s2 }
   0x5   :  { %46 = vadd.xlane.f32.xlu1 %v45_v9  ;;  %v39_v10 = vsel %vm38_vm0, %v34_v6, 0.0  ;;  %v42_v12 = vsel %vm38_vm0, %v35_v8, 0.0  ;;  %v101_v15 = vld [vmem:[%s390_s3 + $0x10] sm:$0xff]  ;;  %v276_v16 = vmov 0.0|0.0   ;;  %v229_v17 = vpack.c.bf16 %v100_v14, %v99_v13  ;;  %v102_v18 = vld [vmem:[%s390_s3 + $0x18] sm:$0xff]  ;;  %s279_s11 = smov [#allocation3]  }
   0x6   :  { %40 = vadd.xlane.f32.xlu0 %v39_v10  ;;  %228 = vmatprep.subr.bf16.mxu0 %v276_v16  ;;  %vm277_vm1 = vmmov 0   ;;  %v278_v19 = vmov 0.0   ;;  %v232_v20 = vpack.c.bf16 %v102_v18, %v101_v15  ;;  %vm56_vm2 = vcmask 1041408   ;;  %s201_s12 = sshll.u32 %s279_s11, 4  ;;  %s202_s12 = int_to_ptr.vmem [resolvable:$true] %s201_s12 }
   0x7   :  { %225 = vmatprep.mubr.msk.f32.mxu0 %vm277_vm1, %v278_v19  ;;  %230 = vmatpush3.bf16.msra.mxu0 %v229_v17  ;;  %vm110_vm3 = vcmask 261120   ;;  %s252_s13 = scalar_lea.vmem %s202_s12, 32  ;;  %p257_p1 = scmp.lt.s32.totalorder %s202_s12, %s202_s12 }
   0x8   :  { %231 = vmatprep.subr.bf16.mxu0 %v276_v16  ;;  %p253_p0 = scmp.ne.s32.totalorder %s202_s12, %s252_s13  ;;  %p258_p2 = scmp.lt.s32.totalorder %s252_s13, %s252_s13 }
   0x9   :  { %49 = vadd.xlane.f32.xlu1 %v48_v11 }
   0xa   :  { %43 = vadd.xlane.f32.xlu0 %v42_v12  ;;  %p259_p3 = por %p258_p2, %p257_p1 }
   0xb   :  { %233 = vmatpush3.bf16.msra.mxu0 %v232_v20 }
   0xc   :  { %p260_p4 = pnand %p259_p3, %p253_p0 }
  0x92   :  { %v47_v22 = vpop.xlane.xlu1 %46 }
  0x93   :  { %v41_v23 = vpop.xlane.xlu0 %40  ;;  %v54_v24 = vadd.f32 %v51_v21, %v47_v22 }
  0x94   :  { %v52_v25 = vadd.f32 %v51_v21, %v41_v23 }
  0x95   :  { %v59_v30 = vsel %vm56_vm2, %v54_v24, -inf }
  0x96   :  { %v50_v26 = vpop.xlane.xlu1 %49  ;;  %v57_v32 = vsel %vm56_vm2, %v52_v25, -inf }
  0x97   :  { %v55_v27 = vadd.f32 %v51_v21, %v50_v26  ;;  %v44_v28 = vpop.xlane.xlu0 %43 }
  0x98   :  { %v53_v29 = vadd.f32 %v51_v21, %v44_v28 }
  0x99   :  { %v60_v31 = vsel %vm56_vm2, %v55_v27, -inf }
  0x9a   :  { %v62_v33 = vmax.f32 %v59_v30, %v60_v31  ;;  %v58_v34 = vsel %vm56_vm2, %v53_v29, -inf }
  0x9b   :  { %v61_v35 = vmax.f32 %v57_v32, %v58_v34 }
  0x9d   :  { %v63_v36 = vmax.f32 %v61_v35, %v62_v33 }
  0x9f   :  { %v64_v37 = vsub.f32 %v52_v25, %v63_v36  ;;  %v65_v38 = vsub.f32 %v53_v29, %v63_v36  ;;  %v66_v39 = vsub.f32 %v54_v24, %v63_v36  ;;  %v67_v40 = vsub.f32 %v55_v27, %v63_v36 }
  0xa1   :  { %v68_v41 = vmul.f32 1.442695, %v64_v37  ;;  %v70_v42 = vmul.f32 1.442695, %v65_v38  ;;  %v72_v43 = vmul.f32 1.442695, %v66_v39 }
  0xa2   :  { %v74_v44 = vmul.f32 1.442695, %v67_v40 }
  0xa3   :  { %238 = vpow2.f32 %v68_v41 }
  0xa4   :  { %240 = vpow2.f32 %v70_v42 }
  0xa5   :  { %242 = vpow2.f32 %v72_v43 }
  0xa6   :  { %244 = vpow2.f32 %v74_v44 }
  0xad   :  { %v239_v45 = vpop.eup %238 }
  0xae   :  { %v241_v46 = vpop.eup %240  ;;  %v76_v47 = vsel %vm56_vm2, %v239_v45, 0.0 }
  0xaf   :  { %v243_v48 = vpop.eup %242  ;;  %v77_v49 = vsel %vm56_vm2, %v241_v46, 0.0 }
  0xb0   :  { %v245_v50 = vpop.eup %244  ;;  %v78_v51 = vadd.f32 %v77_v49, %v76_v47  ;;  %v79_v52 = vsel %vm56_vm2, %v243_v48, 0.0 }
  0xb1   :  { %v81_v54 = vsel %vm56_vm2, %v245_v50, 0.0 }
  0xb2   :  { %v80_v53 = vadd.f32 %v79_v52, %v78_v51 }
  0xb4   :  { %v82_v55 = vadd.f32 %v81_v54, %v80_v53 }
  0xb6   :  { %246 = vrcp.f32 %v82_v55 }
  0xc0   :  { %v247_v56 = vpop.eup %246 }
  0xc1   :  { %v85_v57 = vmul.f32 %v247_v56, %v241_v46  ;;  %v84_v58 = vmul.f32 %v247_v56, %v239_v45  ;;  %v86_v59 = vmul.f32 %v247_v56, %v243_v48  ;;  %v87_v60 = vmul.f32 %v247_v56, %v245_v50 }
  0xc3   :  { %v88_v61 = vmul.f32 %v84_v58, %v322_v3  ;;  %v89_v62 = vmul.f32 %v85_v57, %v332_v5  ;;  %v90_v63 = vmul.f32 %v86_v59, %v313_v0  ;;  %v91_v1 = vmul.f32 %v87_v60, %v327_v4  ;;  %v210_v3 = vld [vmem:[%s391_s4] ss:$0 sm:$0xff] }
  0xc5   :  { %v92_v2 = vsel %vm38_vm0, %v88_v61, 0.0  ;;  %v93_v6 = vsel %vm38_vm0, %v89_v62, 0.0  ;;  %v95_v8 = vsel %vm38_vm0, %v90_v63, 0.0  ;;  %v97_v10 = vsel %vm38_vm0, %v91_v1, 0.0 }
  0xc6   :  { %v94_v7 = vadd.f32 %v93_v6, %v92_v2 }
  0xc8   :  { %v96_v9 = vadd.f32 %v95_v8, %v94_v7 }
  0xca   :  { %v98_v11 = vadd.f32 %v97_v10, %v96_v9 }
  0xcc   :  { %226 = vmatmul.mubr.msk.f32.vlgmr.msra.gmra.mrb[0].mxu0 %vm110_vm3, %v98_v11 }
 0x19f   :  { %v180_v0 = vpop.f32.mrb[0].mxu0 }
 0x1a0   :  { %v181_v5 = vadd.f32 %v210_v3, %v180_v0  ;;  %v227_v4 = vpop.f32.mrb[1].mxu0 }
 0x1a2   :  { %v184_v12 = vand.u32 2147483647, %v181_v5  ;;  %vm188_vm4 = vcmp.ge.f32.partialorder %v181_v5, 0.0 }
 0x1a4   :  { %v185_v13 = vsub.f32 0.0, %v184_v12 }
 0x1a6   :  { %v186_v14 = vmul.f32 1.442695, %v185_v13 }
 0x1a8   :  { %248 = vpow2.f32 %v186_v14 }
 0x1b2   :  { %v249_v15 = vpop.eup %248 }
 0x1b3   :  { %v189_v16 = vadd.f32 1.0, %v249_v15 }
 0x1b5   :  { %250 = vrcp.f32 %v189_v16 }
 0x1bf   :  { %v251_v17 = vpop.eup %250 }
 0x1c0   :  { %v192_v18 = vmul.f32 %v251_v17, %v249_v15 }
 0x1c2   :  { %v193_v19 = vsel %vm188_vm4, %v251_v17, %v192_v18 }
 0x1c3   :  { %194 = vst [vmem:[#allocation3] sm:$0x3] %v193_v19 }
 0x1c4   :  { %263 = shalt.err (!%p260_p4)
}
 0x1c5   :  { %s264_s15 = scalar_lea.hbm %s392_s5, 32 }
 0x1c6   :  { %p265_p5 = scmp.ne.s32.totalorder %s392_s5, %s264_s15  ;;  %p268_p6 = scmp.lt.u32.totalorder %s264_s15, %s392_s5 }
 0x1c8   :  { %p270_p7 = pnand %p268_p6, %p265_p5 }
 0x1ca   :  { %273 = shalt.err (!%p270_p7)
}
 0x1cb   :  { %204 = dma.vmem_to_hbm [thread:$0]  %s202_s12, 32, %s392_s5, [#allocation4]  }
 0x1cc   :  { %274 = dma.done.wait [#allocation4], 32  }
 0x1cd   :  { %275 = vsyncadd [#allocation4], 4294967264 }
 0x1ce   :  { %208 = vsyncpa [#allocation4], 1 }

</bundles_post_ra>
